<compile_context>
chip_gen: v6e
topology: v6e:2x2x1
jax: 0.10.0
libtpu: 0.0.40
codegen_flags: <defaults>
</compile_context>

<pallas_src>
import jax
import jax.numpy as jnp
from jax.experimental import pallas as pl
from jax.experimental.pallas import tpu as pltpu

EPS = 1e-6          # nn.CosineSimilarity(dim=1, eps=1e-06)
INV_EPS = 1.0 / EPS


# ---------------------------------------------------------------------------
# In-kernel helpers (traced inside the Pallas kernel body)
# ---------------------------------------------------------------------------
def _linear_T(x, w):
    # x @ w.T with torch nn.Linear weight layout (out, in); contraction on MXU,
    # no wrapper-side transpose needed.
    return jax.lax.dot_general(x, w, (((1,), (1,)), ((), ())),
                               preferred_element_type=jnp.float32)


def _row_inv_norms(mem):
    # (N, E) -> (1, N) of 1/||row||, with N on the lane axis.
    # sum-of-squares via a ones @ (mem*mem).T MXU dot keeps it lane-dense.
    ones = jnp.ones((1, mem.shape[1]), jnp.float32)
    sq = jax.lax.dot_general(ones, mem * mem, (((1,), (1,)), ((), ())),
                             preferred_element_type=jnp.float32)     # (1, N)
    return jax.lax.rsqrt(sq)                                         # EUP


def _attend(q, mem_k, mem_v, inv_kn):
    # q: (1, E), mem_k/mem_v: (N, E), inv_kn: (1, N)  ->  (1, E)
    dots = jax.lax.dot_general(q, mem_k, (((1,), (1,)), ((), ())),
                               preferred_element_type=jnp.float32)   # (1, N)
    inv_qn = jax.lax.rsqrt(jnp.sum(q * q, axis=1, keepdims=True))    # (1, 1)
    # torch clamp: x / max(||q||*||m||, eps)  ==  x * min(inv_q*inv_m, 1/eps)
    cos = dots * jnp.minimum(inv_qn * inv_kn, INV_EPS)               # (1, N)
    # softmax over the N memories (torch dim=0 over rows == lane axis here)
    m = jnp.max(cos, axis=1, keepdims=True)
    e = jnp.exp(cos - m)
    w = e * pl.reciprocal(jnp.sum(e, axis=1, keepdims=True), approx=True)
    return jnp.dot(w, mem_v, preferred_element_type=jnp.float32)     # (1, E)


# ---------------------------------------------------------------------------
# Pallas kernel: one example per grid point (2-hop KV memory net + scoring)
# ---------------------------------------------------------------------------
def kvmem_kernel(q_ref, persona_ref, keys_ref, values_ref, cands_ref,
                 r_ref, r2_ref, preds_ref):
    q = q_ref[...]                         # (1, E)
    persona = persona_ref[...]             # (Np, E)
    keys = keys_ref[...]                   # (Nk, E)
    values = values_ref[...]               # (Nk, E)
    cands = cands_ref[...]                 # (Nc, E)
    weights = (r_ref[...], r2_ref[...])    # each (E, E), torch (out, in) layout

    # Hoisted out of the 2-hop loop: inverse row norms of the static memories.
    inv_pn = _row_inv_norms(persona)       # (1, Np)
    inv_kn = _row_inv_norms(keys)          # (1, Nk)
    inv_cn = _row_inv_norms(cands)         # (1, Nc)

    # for _ in range(2): hop 0 uses R, hop 1 uses R2 (exactly as in the module)
    for hop in range(2):
        w = weights[hop]
        fhs = _attend(q, persona, persona, inv_pn)                   # (1, E)
        q_plus = _linear_T(q + fhs, w)                               # (1, E)
        fhs = _attend(q_plus, keys, values, inv_kn)                  # (1, E)
        q = _linear_T(q_plus + fhs, w)                               # (1, E)

    # Final candidate cosine scores, lane-dense (1, Nc).
    dots = jax.lax.dot_general(q, cands, (((1,), (1,)), ((), ())),
                               preferred_element_type=jnp.float32)   # (1, Nc)
    inv_qn = jax.lax.rsqrt(jnp.sum(q * q, axis=1, keepdims=True))
    preds_ref[...] = dots * jnp.minimum(inv_qn * inv_cn, INV_EPS)


# ---------------------------------------------------------------------------
# Wrappers: embedding bag-of-words encode (glue) + pallas_call
# ---------------------------------------------------------------------------
def _encode(emb, toks):
    # torch: self.shared_emb(tokens).sum(0) per sentence -> bag-of-words sums
    return jnp.take(emb, toks, axis=0).sum(axis=-2)


def kvmemnn_forward_batched(xs, candidates, persona, keys, values, params):
    """Batched forward.
       xs (B, Lx), candidates (B, Nc, L), persona (B, Np, L),
       keys (B, Nk, L), values (B, Nk, L)  ->  preds (B, Nc)."""
    shared_emb = params["shared_emb"].astype(jnp.float32)
    cand_emb = params["cand_emb"].astype(jnp.float32)
    R = params["R"].astype(jnp.float32)      # (E, E) torch Linear weight (out, in)
    R2 = params["R2"].astype(jnp.float32)

    q = _encode(shared_emb, xs)[:, None, :]           # (B, 1, E)
    enc_persona = _encode(shared_emb, persona)        # (B, Np, E)
    enc_keys = _encode(shared_emb, keys)              # (B, Nk, E)
    enc_values = _encode(shared_emb, values)          # (B, Nk, E)
    enc_cands = _encode(cand_emb, candidates)         # (B, Nc, E)

    B, _, E = q.shape
    Np = enc_persona.shape[1]
    Nk = enc_keys.shape[1]
    Nc = enc_cands.shape[1]

    preds = pl.pallas_call(
        kvmem_kernel,
        out_shape=jax.ShapeDtypeStruct((B, 1, Nc), jnp.float32),
        grid=(B,),
        in_specs=[
            pl.BlockSpec((None, 1, E), lambda b: (b, 0, 0)),    # q
            pl.BlockSpec((None, Np, E), lambda b: (b, 0, 0)),   # persona
            pl.BlockSpec((None, Nk, E), lambda b: (b, 0, 0)),   # keys
            pl.BlockSpec((None, Nk, E), lambda b: (b, 0, 0)),   # values
            pl.BlockSpec((None, Nc, E), lambda b: (b, 0, 0)),   # candidates
            pl.BlockSpec((E, E), lambda b: (0, 0)),             # R  (shared)
            pl.BlockSpec((E, E), lambda b: (0, 0)),             # R2 (shared)
        ],
        out_specs=pl.BlockSpec((None, 1, Nc), lambda b: (b, 0, 0)),
        compiler_params=pltpu.CompilerParams(
            dimension_semantics=("parallel",)),   # megacore sharding on v7x
    )(q, enc_persona, enc_keys, enc_values, enc_cands, R, R2)

    return preds[:, 0, :]                                           # (B, Nc)


def kvmemnn_forward(xs, candidates, persona, keys, values, params):
    # Single example, matching the torch module's forward (xs is (1, Lx)).
    preds = kvmemnn_forward_batched(
        xs.reshape(1, -1), candidates[None], persona[None],
        keys[None], values[None], params)
    return preds[0]                                                 # (Nc,)


# ---------------------------------------------------------------------------
# Pure-JAX reference (mirrors the torch forward) for validation
# ---------------------------------------------------------------------------
def kvmemnn_reference(xs, candidates, persona, keys, values, params):
    shared_emb, cand_emb = params["shared_emb"], params["cand_emb"]
    R, R2 = params["R"], params["R2"]

    enc_keys = _encode(shared_emb, keys)
    enc_values = _encode(shared_emb, values)
    enc_cands = _encode(cand_emb, candidates)
    enc_persona = _encode(shared_emb, persona)
    q = _encode(shared_emb, xs).reshape(-1)

    def cosine(v, mem):
        dots = mem @ v
        return dots / jnp.maximum(jnp.linalg.norm(v) *
                                  jnp.linalg.norm(mem, axis=1), EPS)

    for hop in range(2):
        W = R if hop == 0 else R2
        ret = jax.nn.softmax(cosine(q, enc_persona), axis=0)
        fhs = (ret[:, None] * enc_persona).sum(axis=0)
        q_plus = (q + fhs) @ W.T
        ret = jax.nn.softmax(cosine(q_plus, enc_keys), axis=0)
        fhs = (ret[:, None] * enc_values).sum(axis=0)
        q = (q_plus + fhs) @ W.T

    return cosine(q, enc_cands)


if __name__ == "__main__":
    key = jax.random.PRNGKey(0)
    (k_emb, k_cemb, k_R, k_R2,
     k_x, k_c, k_p, k_k, k_v) = jax.random.split(key, 9)

    vocab_size = 50
    emb_size = 32        # embedding_size
    n_persona = 5
    n_keys = 6
    n_cands = 7
    seq_len = 8
    batch = 4

    # Deterministic parameter init (shapes match the torch module's __init__).
    params = {
        "shared_emb": jax.random.normal(k_emb, (vocab_size, emb_size), jnp.float32),
        "cand_emb":   jax.random.normal(k_cemb, (vocab_size, emb_size), jnp.float32),
        "R":  jax.random.normal(k_R, (emb_size, emb_size), jnp.float32) * 0.1,
        "R2": jax.random.normal(k_R2, (emb_size, emb_size), jnp.float32) * 0.1,
    }

    # ---- single example (matches the torch module's forward signature) ----
    xs = jax.random.randint(k_x, (1, seq_len), 0, vocab_size)
    candidates = jax.random.randint(k_c, (n_cands, seq_len), 0, vocab_size)
    persona = jax.random.randint(k_p, (n_persona, seq_len), 0, vocab_size)
    keys = jax.random.randint(k_k, (n_keys, seq_len), 0, vocab_size)
    values = jax.random.randint(k_v, (n_keys, seq_len), 0, vocab_size)

    preds = jax.block_until_ready(
        kvmemnn_forward(xs, candidates, persona, keys, values, params))
    ref = kvmemnn_reference(xs, candidates, persona, keys, values, params)
    assert preds.shape == (n_cands,)
    assert jnp.allclose(preds, ref, rtol=2e-3, atol=2e-3), (preds, ref)

    # ---- batched call (grid over B, parallel across TCs on v7x) ----
    xs_b = jax.random.randint(k_x, (batch, seq_len), 0, vocab_size)
    cands_b = jax.random.randint(k_c, (batch, n_cands, seq_len), 0, vocab_size)
    persona_b = jax.random.randint(k_p, (batch, n_persona, seq_len), 0, vocab_size)
    keys_b = jax.random.randint(k_k, (batch, n_keys, seq_len), 0, vocab_size)
    values_b = jax.random.randint(k_v, (batch, n_keys, seq_len), 0, vocab_size)

    preds_b = jax.block_until_ready(
        kvmemnn_forward_batched(xs_b, cands_b, persona_b, keys_b, values_b, params))
    ref_b = jax.vmap(kvmemnn_reference, in_axes=(0, 0, 0, 0, 0, None))(
        xs_b, cands_b, persona_b, keys_b, values_b, params)
    assert preds_b.shape == (batch, n_cands)
    assert jnp.allclose(preds_b, ref_b, rtol=2e-3, atol=2e-3), (preds_b, ref_b)

    print("KERNEL_OK")
</pallas_src>

<mosaic_0001>
module attributes {stable_mosaic.version = 11 : i64} {
  func.func @kvmem_kernel(%arg0: i32, %arg1: memref<1x1x32xf32, #tpu.memory_space<vmem>>, %arg2: memref<1x5x32xf32, #tpu.memory_space<vmem>>, %arg3: memref<1x6x32xf32, #tpu.memory_space<vmem>>, %arg4: memref<1x6x32xf32, #tpu.memory_space<vmem>>, %arg5: memref<1x7x32xf32, #tpu.memory_space<vmem>>, %arg6: memref<32x32xf32, #tpu.memory_space<vmem>>, %arg7: memref<32x32xf32, #tpu.memory_space<vmem>>, %arg8: memref<1x1x7xf32, #tpu.memory_space<vmem>>) attributes {dimension_semantics = [#tpu.dimension_semantics<parallel>], iteration_bounds = array<i64: 1>, scalar_prefetch = 0 : i64, scratch_operands = 0 : i64, tpu.core_type = #tpu.core_type<tc>, window_params = [{transform_indices = @transform_0, window_bounds = array<i64: 1, 1, 32>}, {transform_indices = @transform_1, window_bounds = array<i64: 1, 5, 32>}, {transform_indices = @transform_2, window_bounds = array<i64: 1, 6, 32>}, {transform_indices = @transform_3, window_bounds = array<i64: 1, 6, 32>}, {transform_indices = @transform_4, window_bounds = array<i64: 1, 7, 32>}, {pipeline_mode = #tpu.pipeline_mode<synchronous>, transform_indices = @transform_5, window_bounds = array<i64: 32, 32>}, {pipeline_mode = #tpu.pipeline_mode<synchronous>, transform_indices = @transform_6, window_bounds = array<i64: 32, 32>}, {transform_indices = @transform_7, window_bounds = array<i64: 1, 1, 7>}]} {
    %c0 = arith.constant 0 : index
    %c0_0 = arith.constant 0 : index
    %c0_1 = arith.constant 0 : index
    %0 = vector.load %arg1[%c0, %c0_0, %c0_1] : memref<1x1x32xf32, #tpu.memory_space<vmem>>, vector<1x1x32xf32>
    %1 = vector.shape_cast %0 : vector<1x1x32xf32> to vector<1x32xf32>
    %c0_2 = arith.constant 0 : index
    %c0_3 = arith.constant 0 : index
    %c0_4 = arith.constant 0 : index
    %2 = vector.load %arg2[%c0_2, %c0_3, %c0_4] : memref<1x5x32xf32, #tpu.memory_space<vmem>>, vector<1x5x32xf32>
    %3 = vector.shape_cast %2 : vector<1x5x32xf32> to vector<5x32xf32>
    %c0_5 = arith.constant 0 : index
    %c0_6 = arith.constant 0 : index
    %c0_7 = arith.constant 0 : index
    %4 = vector.load %arg3[%c0_5, %c0_6, %c0_7] : memref<1x6x32xf32, #tpu.memory_space<vmem>>, vector<1x6x32xf32>
    %5 = vector.shape_cast %4 : vector<1x6x32xf32> to vector<6x32xf32>
    %c0_8 = arith.constant 0 : index
    %c0_9 = arith.constant 0 : index
    %c0_10 = arith.constant 0 : index
    %6 = vector.load %arg4[%c0_8, %c0_9, %c0_10] : memref<1x6x32xf32, #tpu.memory_space<vmem>>, vector<1x6x32xf32>
    %7 = vector.shape_cast %6 : vector<1x6x32xf32> to vector<6x32xf32>
    %c0_11 = arith.constant 0 : index
    %c0_12 = arith.constant 0 : index
    %c0_13 = arith.constant 0 : index
    %8 = vector.load %arg5[%c0_11, %c0_12, %c0_13] : memref<1x7x32xf32, #tpu.memory_space<vmem>>, vector<1x7x32xf32>
    %9 = vector.shape_cast %8 : vector<1x7x32xf32> to vector<7x32xf32>
    %c0_14 = arith.constant 0 : index
    %c0_15 = arith.constant 0 : index
    %10 = vector.load %arg6[%c0_14, %c0_15] : memref<32x32xf32, #tpu.memory_space<vmem>>, vector<32x32xf32>
    %c0_16 = arith.constant 0 : index
    %c0_17 = arith.constant 0 : index
    %11 = vector.load %arg7[%c0_16, %c0_17] : memref<32x32xf32, #tpu.memory_space<vmem>>, vector<32x32xf32>
    %cst = arith.constant 1.000000e+00 : f32
    %12 = vector.broadcast %cst : f32 to vector<1x32xf32>
    %13 = arith.mulf %3, %3 : vector<5x32xf32>
    %cst_18 = arith.constant dense<0.000000e+00> : vector<1x5xf32>
    %14 = tpu.matmul %12, %13, %cst_18 {dimension_numbers = #tpu.dot_dimension_numbers<[1], [1], [0], [0], [0, 0, 1, 0], [], []>} : vector<1x32xf32>, vector<5x32xf32>, vector<1x5xf32> -> vector<1x5xf32>
    %15 = math.rsqrt %14 : vector<1x5xf32>
    %cst_19 = arith.constant 1.000000e+00 : f32
    %16 = vector.broadcast %cst_19 : f32 to vector<1x32xf32>
    %17 = arith.mulf %5, %5 : vector<6x32xf32>
    %cst_20 = arith.constant dense<0.000000e+00> : vector<1x6xf32>
    %18 = tpu.matmul %16, %17, %cst_20 {dimension_numbers = #tpu.dot_dimension_numbers<[1], [1], [0], [0], [0, 0, 1, 0], [], []>} : vector<1x32xf32>, vector<6x32xf32>, vector<1x6xf32> -> vector<1x6xf32>
    %19 = math.rsqrt %18 : vector<1x6xf32>
    %cst_21 = arith.constant 1.000000e+00 : f32
    %20 = vector.broadcast %cst_21 : f32 to vector<1x32xf32>
    %21 = arith.mulf %9, %9 : vector<7x32xf32>
    %cst_22 = arith.constant dense<0.000000e+00> : vector<1x7xf32>
    %22 = tpu.matmul %20, %21, %cst_22 {dimension_numbers = #tpu.dot_dimension_numbers<[1], [1], [0], [0], [0, 0, 1, 0], [], []>} : vector<1x32xf32>, vector<7x32xf32>, vector<1x7xf32> -> vector<1x7xf32>
    %23 = math.rsqrt %22 : vector<1x7xf32>
    %cst_23 = arith.constant dense<0.000000e+00> : vector<1x5xf32>
    %24 = tpu.matmul %1, %3, %cst_23 {dimension_numbers = #tpu.dot_dimension_numbers<[1], [1], [0], [0], [0, 0, 1, 0], [], []>} : vector<1x32xf32>, vector<5x32xf32>, vector<1x5xf32> -> vector<1x5xf32>
    %25 = arith.mulf %1, %1 : vector<1x32xf32>
    %cst_24 = arith.constant dense<0.000000e+00> : vector<1xf32>
    %26 = vector.multi_reduction <add>, %25, %cst_24 [1] : vector<1x32xf32> to vector<1xf32>
    %27 = vector.shape_cast %26 : vector<1xf32> to vector<1x1xf32>
    %28 = math.rsqrt %27 : vector<1x1xf32>
    %29 = vector.broadcast %28 : vector<1x1xf32> to vector<1x5xf32>
    %30 = arith.mulf %29, %15 : vector<1x5xf32>
    %cst_25 = arith.constant 1.000000e+06 : f32
    %31 = vector.broadcast %cst_25 : f32 to vector<1x5xf32>
    %32 = arith.minimumf %30, %31 : vector<1x5xf32>
    %33 = arith.mulf %24, %32 : vector<1x5xf32>
    %cst_26 = arith.constant dense<0xFF800000> : vector<1xf32>
    %34 = vector.multi_reduction <maximumf>, %33, %cst_26 [1] : vector<1x5xf32> to vector<1xf32>
    %35 = vector.shape_cast %34 : vector<1xf32> to vector<1x1xf32>
    %36 = vector.broadcast %35 : vector<1x1xf32> to vector<1x5xf32>
    %37 = arith.subf %33, %36 : vector<1x5xf32>
    %38 = math.exp %37 : vector<1x5xf32>
    %cst_27 = arith.constant dense<0.000000e+00> : vector<1xf32>
    %39 = vector.multi_reduction <add>, %38, %cst_27 [1] : vector<1x5xf32> to vector<1xf32>
    %40 = vector.shape_cast %39 : vector<1xf32> to vector<1x1xf32>
    %41 = tpu.reciprocal %40 {approx = true} : vector<1x1xf32> -> vector<1x1xf32>
    %42 = vector.broadcast %41 : vector<1x1xf32> to vector<1x5xf32>
    %43 = arith.mulf %38, %42 : vector<1x5xf32>
    %cst_28 = arith.constant dense<0.000000e+00> : vector<1x32xf32>
    %44 = tpu.matmul %43, %3, %cst_28 {dimension_numbers = #tpu.dot_dimension_numbers<[1], [0], [0], [1], [0, 0, 1, 1], [], []>} : vector<1x5xf32>, vector<5x32xf32>, vector<1x32xf32> -> vector<1x32xf32>
    %45 = arith.addf %1, %44 : vector<1x32xf32>
    %cst_29 = arith.constant dense<0.000000e+00> : vector<1x32xf32>
    %46 = tpu.matmul %45, %10, %cst_29 {dimension_numbers = #tpu.dot_dimension_numbers<[1], [1], [0], [0], [0, 0, 1, 0], [], []>} : vector<1x32xf32>, vector<32x32xf32>, vector<1x32xf32> -> vector<1x32xf32>
    %cst_30 = arith.constant dense<0.000000e+00> : vector<1x6xf32>
    %47 = tpu.matmul %46, %5, %cst_30 {dimension_numbers = #tpu.dot_dimension_numbers<[1], [1], [0], [0], [0, 0, 1, 0], [], []>} : vector<1x32xf32>, vector<6x32xf32>, vector<1x6xf32> -> vector<1x6xf32>
    %48 = arith.mulf %46, %46 : vector<1x32xf32>
    %cst_31 = arith.constant dense<0.000000e+00> : vector<1xf32>
    %49 = vector.multi_reduction <add>, %48, %cst_31 [1] : vector<1x32xf32> to vector<1xf32>
    %50 = vector.shape_cast %49 : vector<1xf32> to vector<1x1xf32>
    %51 = math.rsqrt %50 : vector<1x1xf32>
    %52 = vector.broadcast %51 : vector<1x1xf32> to vector<1x6xf32>
    %53 = arith.mulf %52, %19 : vector<1x6xf32>
    %cst_32 = arith.constant 1.000000e+06 : f32
    %54 = vector.broadcast %cst_32 : f32 to vector<1x6xf32>
    %55 = arith.minimumf %53, %54 : vector<1x6xf32>
    %56 = arith.mulf %47, %55 : vector<1x6xf32>
    %cst_33 = arith.constant dense<0xFF800000> : vector<1xf32>
    %57 = vector.multi_reduction <maximumf>, %56, %cst_33 [1] : vector<1x6xf32> to vector<1xf32>
    %58 = vector.shape_cast %57 : vector<1xf32> to vector<1x1xf32>
    %59 = vector.broadcast %58 : vector<1x1xf32> to vector<1x6xf32>
    %60 = arith.subf %56, %59 : vector<1x6xf32>
    %61 = math.exp %60 : vector<1x6xf32>
    %cst_34 = arith.constant dense<0.000000e+00> : vector<1xf32>
    %62 = vector.multi_reduction <add>, %61, %cst_34 [1] : vector<1x6xf32> to vector<1xf32>
    %63 = vector.shape_cast %62 : vector<1xf32> to vector<1x1xf32>
    %64 = tpu.reciprocal %63 {approx = true} : vector<1x1xf32> -> vector<1x1xf32>
    %65 = vector.broadcast %64 : vector<1x1xf32> to vector<1x6xf32>
    %66 = arith.mulf %61, %65 : vector<1x6xf32>
    %cst_35 = arith.constant dense<0.000000e+00> : vector<1x32xf32>
    %67 = tpu.matmul %66, %7, %cst_35 {dimension_numbers = #tpu.dot_dimension_numbers<[1], [0], [0], [1], [0, 0, 1, 1], [], []>} : vector<1x6xf32>, vector<6x32xf32>, vector<1x32xf32> -> vector<1x32xf32>
    %68 = arith.addf %46, %67 : vector<1x32xf32>
    %cst_36 = arith.constant dense<0.000000e+00> : vector<1x32xf32>
    %69 = tpu.matmul %68, %10, %cst_36 {dimension_numbers = #tpu.dot_dimension_numbers<[1], [1], [0], [0], [0, 0, 1, 0], [], []>} : vector<1x32xf32>, vector<32x32xf32>, vector<1x32xf32> -> vector<1x32xf32>
    %cst_37 = arith.constant dense<0.000000e+00> : vector<1x5xf32>
    %70 = tpu.matmul %69, %3, %cst_37 {dimension_numbers = #tpu.dot_dimension_numbers<[1], [1], [0], [0], [0, 0, 1, 0], [], []>} : vector<1x32xf32>, vector<5x32xf32>, vector<1x5xf32> -> vector<1x5xf32>
    %71 = arith.mulf %69, %69 : vector<1x32xf32>
    %cst_38 = arith.constant dense<0.000000e+00> : vector<1xf32>
    %72 = vector.multi_reduction <add>, %71, %cst_38 [1] : vector<1x32xf32> to vector<1xf32>
    %73 = vector.shape_cast %72 : vector<1xf32> to vector<1x1xf32>
    %74 = math.rsqrt %73 : vector<1x1xf32>
    %75 = vector.broadcast %74 : vector<1x1xf32> to vector<1x5xf32>
    %76 = arith.mulf %75, %15 : vector<1x5xf32>
    %cst_39 = arith.constant 1.000000e+06 : f32
    %77 = vector.broadcast %cst_39 : f32 to vector<1x5xf32>
    %78 = arith.minimumf %76, %77 : vector<1x5xf32>
    %79 = arith.mulf %70, %78 : vector<1x5xf32>
    %cst_40 = arith.constant dense<0xFF800000> : vector<1xf32>
    %80 = vector.multi_reduction <maximumf>, %79, %cst_40 [1] : vector<1x5xf32> to vector<1xf32>
    %81 = vector.shape_cast %80 : vector<1xf32> to vector<1x1xf32>
    %82 = vector.broadcast %81 : vector<1x1xf32> to vector<1x5xf32>
    %83 = arith.subf %79, %82 : vector<1x5xf32>
    %84 = math.exp %83 : vector<1x5xf32>
    %cst_41 = arith.constant dense<0.000000e+00> : vector<1xf32>
    %85 = vector.multi_reduction <add>, %84, %cst_41 [1] : vector<1x5xf32> to vector<1xf32>
    %86 = vector.shape_cast %85 : vector<1xf32> to vector<1x1xf32>
    %87 = tpu.reciprocal %86 {approx = true} : vector<1x1xf32> -> vector<1x1xf32>
    %88 = vector.broadcast %87 : vector<1x1xf32> to vector<1x5xf32>
    %89 = arith.mulf %84, %88 : vector<1x5xf32>
    %cst_42 = arith.constant dense<0.000000e+00> : vector<1x32xf32>
    %90 = tpu.matmul %89, %3, %cst_42 {dimension_numbers = #tpu.dot_dimension_numbers<[1], [0], [0], [1], [0, 0, 1, 1], [], []>} : vector<1x5xf32>, vector<5x32xf32>, vector<1x32xf32> -> vector<1x32xf32>
    %91 = arith.addf %69, %90 : vector<1x32xf32>
    %cst_43 = arith.constant dense<0.000000e+00> : vector<1x32xf32>
    %92 = tpu.matmul %91, %11, %cst_43 {dimension_numbers = #tpu.dot_dimension_numbers<[1], [1], [0], [0], [0, 0, 1, 0], [], []>} : vector<1x32xf32>, vector<32x32xf32>, vector<1x32xf32> -> vector<1x32xf32>
    %cst_44 = arith.constant dense<0.000000e+00> : vector<1x6xf32>
    %93 = tpu.matmul %92, %5, %cst_44 {dimension_numbers = #tpu.dot_dimension_numbers<[1], [1], [0], [0], [0, 0, 1, 0], [], []>} : vector<1x32xf32>, vector<6x32xf32>, vector<1x6xf32> -> vector<1x6xf32>
    %94 = arith.mulf %92, %92 : vector<1x32xf32>
    %cst_45 = arith.constant dense<0.000000e+00> : vector<1xf32>
    %95 = vector.multi_reduction <add>, %94, %cst_45 [1] : vector<1x32xf32> to vector<1xf32>
    %96 = vector.shape_cast %95 : vector<1xf32> to vector<1x1xf32>
    %97 = math.rsqrt %96 : vector<1x1xf32>
    %98 = vector.broadcast %97 : vector<1x1xf32> to vector<1x6xf32>
    %99 = arith.mulf %98, %19 : vector<1x6xf32>
    %cst_46 = arith.constant 1.000000e+06 : f32
    %100 = vector.broadcast %cst_46 : f32 to vector<1x6xf32>
    %101 = arith.minimumf %99, %100 : vector<1x6xf32>
    %102 = arith.mulf %93, %101 : vector<1x6xf32>
    %cst_47 = arith.constant dense<0xFF800000> : vector<1xf32>
    %103 = vector.multi_reduction <maximumf>, %102, %cst_47 [1] : vector<1x6xf32> to vector<1xf32>
    %104 = vector.shape_cast %103 : vector<1xf32> to vector<1x1xf32>
    %105 = vector.broadcast %104 : vector<1x1xf32> to vector<1x6xf32>
    %106 = arith.subf %102, %105 : vector<1x6xf32>
    %107 = math.exp %106 : vector<1x6xf32>
    %cst_48 = arith.constant dense<0.000000e+00> : vector<1xf32>
    %108 = vector.multi_reduction <add>, %107, %cst_48 [1] : vector<1x6xf32> to vector<1xf32>
    %109 = vector.shape_cast %108 : vector<1xf32> to vector<1x1xf32>
    %110 = tpu.reciprocal %109 {approx = true} : vector<1x1xf32> -> vector<1x1xf32>
    %111 = vector.broadcast %110 : vector<1x1xf32> to vector<1x6xf32>
    %112 = arith.mulf %107, %111 : vector<1x6xf32>
    %cst_49 = arith.constant dense<0.000000e+00> : vector<1x32xf32>
    %113 = tpu.matmul %112, %7, %cst_49 {dimension_numbers = #tpu.dot_dimension_numbers<[1], [0], [0], [1], [0, 0, 1, 1], [], []>} : vector<1x6xf32>, vector<6x32xf32>, vector<1x32xf32> -> vector<1x32xf32>
    %114 = arith.addf %92, %113 : vector<1x32xf32>
    %cst_50 = arith.constant dense<0.000000e+00> : vector<1x32xf32>
    %115 = tpu.matmul %114, %11, %cst_50 {dimension_numbers = #tpu.dot_dimension_numbers<[1], [1], [0], [0], [0, 0, 1, 0], [], []>} : vector<1x32xf32>, vector<32x32xf32>, vector<1x32xf32> -> vector<1x32xf32>
    %cst_51 = arith.constant dense<0.000000e+00> : vector<1x7xf32>
    %116 = tpu.matmul %115, %9, %cst_51 {dimension_numbers = #tpu.dot_dimension_numbers<[1], [1], [0], [0], [0, 0, 1, 0], [], []>} : vector<1x32xf32>, vector<7x32xf32>, vector<1x7xf32> -> vector<1x7xf32>
    %117 = arith.mulf %115, %115 : vector<1x32xf32>
    %cst_52 = arith.constant dense<0.000000e+00> : vector<1xf32>
    %118 = vector.multi_reduction <add>, %117, %cst_52 [1] : vector<1x32xf32> to vector<1xf32>
    %119 = vector.shape_cast %118 : vector<1xf32> to vector<1x1xf32>
    %120 = math.rsqrt %119 : vector<1x1xf32>
    %121 = vector.broadcast %120 : vector<1x1xf32> to vector<1x7xf32>
    %122 = arith.mulf %121, %23 : vector<1x7xf32>
    %cst_53 = arith.constant 1.000000e+06 : f32
    %123 = vector.broadcast %cst_53 : f32 to vector<1x7xf32>
    %124 = arith.minimumf %122, %123 : vector<1x7xf32>
    %125 = arith.mulf %116, %124 : vector<1x7xf32>
    %c0_54 = arith.constant 0 : index
    %c0_55 = arith.constant 0 : index
    %c0_56 = arith.constant 0 : index
    %126 = vector.load %arg8[%c0_54, %c0_55, %c0_56] : memref<1x1x7xf32, #tpu.memory_space<vmem>>, vector<1x1x7xf32>
    %127 = vector.shape_cast %126 : vector<1x1x7xf32> to vector<1x7xf32>
    %128 = vector.shape_cast %125 : vector<1x7xf32> to vector<1x1x7xf32>
    tpu.vector_store %arg8[%c0_54, %c0_55, %c0_56], %128 {strides = array<i32>} : memref<1x1x7xf32, #tpu.memory_space<vmem>>, vector<1x1x7xf32>,
    return
  }
  func.func @transform_0(%arg0: i32) -> (i32, i32, i32) {
    %c0_i32 = arith.constant 0 : i32
    %c0_i32_0 = arith.constant 0 : i32
    %c0_i32_1 = arith.constant 0 : i32
    return %arg0, %c0_i32, %c0_i32_0 : i32, i32, i32
  }
  func.func @transform_1(%arg0: i32) -> (i32, i32, i32) {
    %c0_i32 = arith.constant 0 : i32
    %c0_i32_0 = arith.constant 0 : i32
    %c0_i32_1 = arith.constant 0 : i32
    return %arg0, %c0_i32, %c0_i32_0 : i32, i32, i32
  }
  func.func @transform_2(%arg0: i32) -> (i32, i32, i32) {
    %c0_i32 = arith.constant 0 : i32
    %c0_i32_0 = arith.constant 0 : i32
    %c0_i32_1 = arith.constant 0 : i32
    return %arg0, %c0_i32, %c0_i32_0 : i32, i32, i32
  }
  func.func @transform_3(%arg0: i32) -> (i32, i32, i32) {
    %c0_i32 = arith.constant 0 : i32
    %c0_i32_0 = arith.constant 0 : i32
    %c0_i32_1 = arith.constant 0 : i32
    return %arg0, %c0_i32, %c0_i32_0 : i32, i32, i32
  }
  func.func @transform_4(%arg0: i32) -> (i32, i32, i32) {
    %c0_i32 = arith.constant 0 : i32
    %c0_i32_0 = arith.constant 0 : i32
    %c0_i32_1 = arith.constant 0 : i32
    return %arg0, %c0_i32, %c0_i32_0 : i32, i32, i32
  }
  func.func @transform_5(%arg0: i32) -> (i32, i32) {
    %c0_i32 = arith.constant 0 : i32
    %c0_i32_0 = arith.constant 0 : i32
    %c0_i32_1 = arith.constant 0 : i32
    return %c0_i32, %c0_i32_0 : i32, i32
  }
  func.func @transform_6(%arg0: i32) -> (i32, i32) {
    %c0_i32 = arith.constant 0 : i32
    %c0_i32_0 = arith.constant 0 : i32
    %c0_i32_1 = arith.constant 0 : i32
    return %c0_i32, %c0_i32_0 : i32, i32
  }
  func.func @transform_7(%arg0: i32) -> (i32, i32, i32) {
    %c0_i32 = arith.constant 0 : i32
    %c0_i32_0 = arith.constant 0 : i32
    %c0_i32_1 = arith.constant 0 : i32
    return %arg0, %c0_i32, %c0_i32_0 : i32, i32, i32
  }
}

</mosaic_0001>

<bundles_post_ra>
// kernel: tpu_custom_call.1
= control target key start
LH: loop header
LB: loop body
LE: loop exit
PB: predicated region body
PF: predicated region fallthrough
CT: control target
= control target key end

     0   :  { %vm41_vm0 = vcmask 261120   ;;  %v1617_v1 = vmov 0.0   ;;  %vm1618_vm1 = vmmov 0   ;;  %vm346_vm2 = vcmask 253952   ;;  %s1875_s0 = inlined_call_operand.vmem [shape: f32[1,1,32], index: 0, kind: input, shape index: {}]   ;;  %s1876_s1 = inlined_call_operand.vmem [shape: f32[1,5,32], index: 1, kind: input, shape index: {}]   ;;  %s1877_s2 = inlined_call_operand.vmem [shape: f32[1,6,32], index: 2, kind: input, shape index: {}]   ;;  %s1878_s3 = inlined_call_operand.vmem [shape: f32[1,6,32], index: 3, kind: input, shape index: {}]   ;;  %s1879_s4 = inlined_call_operand.vmem [shape: f32[1,7,32], index: 4, kind: input, shape index: {}]   ;;  %s1880_s5 = inlined_call_operand.vmem [shape: f32[32,32], index: 5, kind: input, shape index: {}]   ;;  %s1881_s6 = inlined_call_operand.vmem [shape: f32[32,32], index: 6, kind: input, shape index: {}]   ;;  %s1882_s7 = inlined_call_operand.hbm [shape: f32[1,1,7], index: 7, kind: output, shape index: {}]  }
   0x1   :  { %v1664_v0 = vld [vmem:[%s1876_s1] sm:$0x1f]  ;;  %1455 = vmatprep.subr.mxu1 %v1617_v1  ;;  %1457 = vmatprep.mubr.msk.f32.mxu1 %vm1618_vm1, %v1617_v1 }
   0x2   :  { %v40_v2 = vmul.f32 %v1664_v0, %v1664_v0  ;;  %v1674_v3 = vld [vmem:[%s1877_s2] sm:$0x3f]  ;;  %1465 = vmatprep.subr.mxu0 %v1617_v1  ;;  %1467 = vmatprep.mubr.msk.f32.mxu0 %vm1618_vm1, %v1617_v1 }
   0x3   :  { %v1679_v4 = vld [vmem:[%s1875_s0] sm:$0x1] }
   0x4   :  { %v345_v5 = vmul.f32 %v1679_v4, %v1679_v4 }
   0x5   :  { %12 = vsyncpa [#allocation3], 0  ;;  %1456 = vmatpush3.xpose.msk.msra.mxu1 %vm41_vm0, %v40_v2  ;;  %v119_v6 = vmul.f32 %v1674_v3, %v1674_v3  ;;  %v1619_v8 = vmov 1.0   ;;  %vm354_vm3 = vcmask 32768   ;;  %v1716_v27 = vld [vmem:[%s1879_s4] sm:$0x7f] }
   0x6   :  { %1460 = vmatprep.subr.mxu1 %v1617_v1  ;;  %v347_v7 = vsel %vm346_vm2, %v345_v5, 0.0  ;;  %v194_v28 = vmul.f32 %v1716_v27, %v1716_v27  ;;  %vm370_vm4 = vcmask 1044480   ;;  %v1731_v29 = vld [vmem:[%s1880_s5 + $0x18] sm:$0xff]  ;;  %v1739_v30 = vld [vmem:[%s1880_s5 + $0x10] sm:$0xff]  ;;  %v1747_v31 = vld [vmem:[%s1880_s5 + $0x8] sm:$0xff]  ;;  %vm366_vm5 = vcmask 39936  }
   0x7   :  { %348 = vadd.xlane.f32.xlu0 %v347_v7  ;;  %v32_v37 = vld [vmem:[%s1880_s5] sm:$0xff]  ;;  %vm613_vm6 = vcmask 40960   ;;  %vm629_vm7 = vcmask 1045504   ;;  %vm625_vm8 = vcmask 48128   ;;  %vm1351_vm9 = vcmask 49152  }
   0x8   :  { %1458 = vmatmul.mubr.msk.f32.vlgmr.msra.gmra.mxu1 %vm41_vm0, %v1619_v8  ;;  %1466 = vmatpush3.xpose.msk.msra.mxu0 %vm41_vm0, %v194_v28  ;;  %v1785_v59 = vld [vmem:[%s1878_s3] sm:$0x3f] }
   0x9   :  { %1461 = vmatpush3.xpose.msk.msra.mxu1 %vm41_vm0, %v119_v6  ;;  %1462 = vmatprep.mubr.msk.f32.mxu1 %vm1618_vm1, %v1617_v1 }
   0xa   :  { %1470 = vmatprep.subr.mxu1 %v1617_v1  ;;  %1475 = vmatprep.subr.mxu0 %v1617_v1 }
   0xb   :  { %1468 = vmatmul.mubr.msk.f32.vlgmr.msra.gmra.mxu0 %vm41_vm0, %v1619_v8 }
   0xc   :  { %1463 = vmatmul.mubr.msk.f32.vlgmr.msra.gmra.mxu1 %vm41_vm0, %v1619_v8  ;;  %1476 = vmatpush3.msk.msra.mxu0 %vm370_vm4, %v1664_v0 }
   0xd   :  { %1471 = vmatpush3.xpose.msk.msra.mxu1 %vm41_vm0, %v1664_v0  ;;  %1472 = vmatprep.mubr.msk.f32.mxu1 %vm1618_vm1, %v1617_v1 }
   0xe   :  { %1480 = vmatprep.subr.mxu1 %v1617_v1  ;;  %1477 = vmatprep.mubr.msk.f32.mxu0 %vm1618_vm1, %v1617_v1 }
   0xf   :  { %1491 = vmatprep.subr.mxu0 %v1617_v1 }
  0x10   :  { %1473 = vmatmul.mubr.msk.f32.vlgmr.msra.gmra.mxu1 %vm41_vm0, %v1679_v4 }
  0x11   :  { %1488 = vmatprep.mubr.msk.f32.mxu1 %vm1618_vm1, %v1617_v1  ;;  %1481 = vmatpush3.xpose.msk.msra.mxu1 %vm41_vm0, %v1731_v29 }
  0x12   :  { %1482 = vmatprep.subr.mxu1 %v1617_v1 }
  0x15   :  { %1483 = vmatpush3.xpose.msk.msra.mxu1 %vm41_vm0, %v1739_v30 }
  0x16   :  { %1484 = vmatprep.subr.mxu1 %v1617_v1 }
  0x19   :  { %1485 = vmatpush3.xpose.msk.msra.mxu1 %vm41_vm0, %v1747_v31 }
  0x1a   :  { %1486 = vmatprep.subr.mxu1 %v1617_v1 }
  0x1d   :  { %1487 = vmatpush3.xpose.msk.msra.mxu1 %vm41_vm0, %v32_v37 }
  0x1e   :  { %1512 = vmatprep.subr.mxu1 %v1617_v1 }
  0x90   :  { %v349_v9 = vpop.xlane.xlu0 %348 }
  0x91   :  { %1563 = vrsqrt.f32 %v349_v9 }
  0x9e   :  { %v1564_v16 = vpop.eup %1563 }
  0xc8   :  { %v114_v10 = vpop.f32.mrf.mxu1 }
  0xc9   :  { %1565 = vrsqrt.f32 %v114_v10 }
  0xca   :  { %v1459_v11 = vpop.f32.mrf.mxu1 }
  0xcb   :  { %v1758_v35 = vpop.f32.mrf.mxu0 }
  0xcc   :  { %v1706_v12 = vpop.f32.mrf.mxu1 }
  0xcd   :  { %v1469_v36 = vpop.f32.mrf.mxu0 }
  0xce   :  { %v1464_v13 = vpop.f32.mrf.mxu1 }
  0xd0   :  { %v341_v14 = vpop.f32.mrf.mxu1 }
  0xd2   :  { %v1474_v15 = vpop.f32.mrf.mxu1 }
  0xd6   :  { %v1708_v17 = vpop.eup %1565 }
  0xd7   :  { %v351_v18 = vmul.f32 %v1708_v17, %v1564_v16 }
  0xd9   :  { %v352_v19 = vmin.f32 %v351_v18, 1000000.0 }
  0xdb   :  { %v353_v20 = vmul.f32 %v352_v19, %v341_v14 }
  0xdd   :  { %v355_v21 = vsel %vm354_vm3, %v353_v20, -inf }
  0xde   :  { %356 = vmax.xlane.f32.xlu0 %v355_v21 }
 0x167   :  { %v357_v22 = vpop.xlane.xlu0 %356 }
 0x168   :  { %v358_v23 = vsub.f32 %v353_v20, %v357_v22 }
 0x16a   :  { %v359_v24 = vmul.f32 1.442695, %v358_v23 }
 0x16c   :  { %1567 = vpow2.f32 %v359_v24  ;;  %v38_v24 = vld [vmem:[%s1881_s6 + $0x10] sm:$0xff] }
 0x179   :  { %v1568_v25 = vpop.eup %1567 }
 0x17a   :  { %v361_v26 = vsel %vm354_vm3, %v1568_v25, 0.0 }
 0x17b   :  { %362 = vadd.xlane.f32.xlu1 %v361_v26  ;;  %v36_v26 = vld [vmem:[%s1881_s6] sm:$0xff] }
 0x204   :  { %v363_v32 = vpop.xlane.xlu1 %362 }
 0x205   :  { %1569 = vrcp.f32 %v363_v32 }
 0x212   :  { %v1570_v33 = vpop.eup %1569 }
 0x213   :  { %v365_v34 = vmul.f32 %v1570_v33, %v1568_v25  ;;  %v37_v25 = vld [vmem:[%s1881_s6 + $0x8] sm:$0xff] }
 0x215   :  { %1478 = vmatmul.mubr.msk.f32.vlgmr.msra.gmra.mxu0 %vm366_vm5, %v365_v34 }
 0x216   :  { %1492 = vmatpush3.xpose.msk.msra.mxu0 %vm41_vm0, %v1674_v3  ;;  %1493 = vmatprep.mubr.msk.f32.mxu0 %vm1618_vm1, %v1617_v1 }
 0x217   :  { %1496 = vmatprep.subr.mxu0 %v1617_v1 }
 0x2d5   :  { %v439_v38 = vpop.f32.mrf.mxu0 }
 0x2d6   :  { %v443_v39 = vadd.f32 %v439_v38, %v1679_v4 }
 0x2d7   :  { %v1479_v40 = vpop.f32.mrf.mxu0 }
 0x2d8   :  { %1489 = vmatmul.mubr.msk.f32.vlgmr.msra.gmra.mxu1 %vm41_vm0, %v443_v39 }
 0x2d9   :  { %1513 = vmatpush3.xpose.msk.msra.mxu1 %vm41_vm0, %v1664_v0  ;;  %1514 = vmatprep.mubr.msk.f32.mxu1 %vm1618_vm1, %v1617_v1 }
 0x2da   :  { %1517 = vmatprep.subr.mxu1 %v1617_v1 }
 0x398   :  { %v525_v41 = vpop.f32.mrf.mxu1 }
 0x399   :  { %1494 = vmatmul.mubr.msk.f32.vlgmr.msra.gmra.mxu0 %vm41_vm0, %v525_v41  ;;  %v605_v42 = vmul.f32 %v525_v41, %v525_v41 }
 0x39a   :  { %v1490_v43 = vpop.f32.mrf.mxu1  ;;  %1498 = vmatprep.mubr.msk.f32.mxu0 %vm1618_vm1, %v1617_v1  ;;  %1497 = vmatpush3.msk.msra.mxu0 %vm629_vm7, %v1785_v59 }
 0x39b   :  { %v606_v44 = vsel %vm346_vm2, %v605_v42, 0.0  ;;  %1501 = vmatprep.subr.mxu0 %v1617_v1 }
 0x39c   :  { %607 = vadd.xlane.f32.xlu1 %v606_v44 }
 0x425   :  { %v608_v45 = vpop.xlane.xlu1 %607 }
 0x426   :  { %1571 = vrsqrt.f32 %v608_v45 }
 0x427   :  { %1573 = vrsqrt.f32 %v1706_v12 }
 0x433   :  { %v1572_v46 = vpop.eup %1571 }
 0x434   :  { %v1777_v47 = vpop.eup %1573 }
 0x435   :  { %v610_v48 = vmul.f32 %v1777_v47, %v1572_v46 }
 0x437   :  { %v611_v49 = vmin.f32 %v610_v48, 1000000.0 }
 0x459   :  { %v601_v50 = vpop.f32.mrf.mxu0 }
 0x45a   :  { %v612_v51 = vmul.f32 %v611_v49, %v601_v50 }
 0x45b   :  { %v1495_v52 = vpop.f32.mrf.mxu0 }
 0x45c   :  { %v614_v53 = vsel %vm613_vm6, %v612_v51, -inf }
 0x45d   :  { %615 = vmax.xlane.f32.xlu0 %v614_v53 }
 0x4e6   :  { %v616_v54 = vpop.xlane.xlu0 %615 }
 0x4e7   :  { %v617_v55 = vsub.f32 %v612_v51, %v616_v54 }
 0x4e9   :  { %v618_v56 = vmul.f32 1.442695, %v617_v55 }
 0x4eb   :  { %1575 = vpow2.f32 %v618_v56 }
 0x4f8   :  { %v1576_v57 = vpop.eup %1575 }
 0x4f9   :  { %v620_v58 = vsel %vm613_vm6, %v1576_v57, 0.0 }
 0x4fa   :  { %621 = vadd.xlane.f32.xlu1 %v620_v58 }
 0x583   :  { %v622_v60 = vpop.xlane.xlu1 %621 }
 0x584   :  { %1577 = vrcp.f32 %v622_v60 }
 0x591   :  { %v1578_v61 = vpop.eup %1577 }
 0x592   :  { %v624_v62 = vmul.f32 %v1578_v61, %v1576_v57 }
 0x594   :  { %1499 = vmatmul.mubr.msk.f32.vlgmr.msra.gmra.mxu0 %vm625_vm8, %v624_v62 }
 0x595   :  { %1502 = vmatpush3.xpose.msk.msra.mxu0 %vm41_vm0, %v1731_v29  ;;  %1509 = vmatprep.mubr.msk.f32.mxu0 %vm1618_vm1, %v1617_v1 }
 0x596   :  { %1503 = vmatprep.subr.mxu0 %v1617_v1 }
 0x599   :  { %1504 = vmatpush3.xpose.msk.msra.mxu0 %vm41_vm0, %v1739_v30 }
 0x59a   :  { %1505 = vmatprep.subr.mxu0 %v1617_v1 }
 0x59d   :  { %1506 = vmatpush3.xpose.msk.msra.mxu0 %vm41_vm0, %v1747_v31 }
 0x59e   :  { %1507 = vmatprep.subr.mxu0 %v1617_v1 }
 0x5a1   :  { %1508 = vmatpush3.xpose.msk.msra.mxu0 %vm41_vm0, %v32_v37 }
 0x5a2   :  { %1533 = vmatprep.subr.mxu0 %v1617_v1 }
 0x654   :  { %v699_v63 = vpop.f32.mrf.mxu0 }
 0x655   :  { %v703_v2 = vadd.f32 %v699_v63, %v525_v41 }
 0x656   :  { %v1500_v4 = vpop.f32.mrf.mxu0 }
 0x657   :  { %1510 = vmatmul.mubr.msk.f32.vlgmr.msra.gmra.mxu0 %vm41_vm0, %v703_v2 }
 0x658   :  { %1534 = vmatpush3.xpose.msk.msra.mxu0 %vm41_vm0, %v1674_v3  ;;  %1535 = vmatprep.mubr.msk.f32.mxu0 %vm1618_vm1, %v1617_v1 }
 0x659   :  { %1538 = vmatprep.subr.mxu0 %v1617_v1 }
 0x717   :  { %v773_v5 = vpop.f32.mrf.mxu0 }
 0x718   :  { %1515 = vmatmul.mubr.msk.f32.vlgmr.msra.gmra.mxu1 %vm41_vm0, %v773_v5  ;;  %v850_v6 = vmul.f32 %v773_v5, %v773_v5 }
 0x719   :  { %v1511_v7 = vpop.f32.mrf.mxu0  ;;  %1518 = vmatpush3.msk.msra.mxu1 %vm370_vm4, %v1664_v0  ;;  %1519 = vmatprep.mubr.msk.f32.mxu1 %vm1618_vm1, %v1617_v1 }
 0x71a   :  { %v851_v8 = vsel %vm346_vm2, %v850_v6, 0.0  ;;  %1522 = vmatprep.subr.mxu1 %v1617_v1 }
 0x71b   :  { %852 = vadd.xlane.f32.xlu0 %v851_v8 }
 0x7a4   :  { %v853_v3 = vpop.xlane.xlu0 %852 }
 0x7a5   :  { %1579 = vrsqrt.f32 %v853_v3 }
 0x7b2   :  { %v1580_v9 = vpop.eup %1579 }
 0x7b3   :  { %v855_v10 = vmul.f32 %v1580_v9, %v1708_v17  ;;  %v39_v17 = vld [vmem:[%s1881_s6 + $0x18] sm:$0xff]  ;;  %s1620_s6 = smov [#allocation2]  }
 0x7b4   :  { %s1359_s21 = sshll.u32 %s1620_s6, 4  ;;  %s1360_s21 = int_to_ptr.vmem [resolvable:$true] %s1359_s21 }
 0x7b5   :  { %v856_v11 = vmin.f32 %v855_v10, 1000000.0  ;;  %s1595_s22 = scalar_lea.vmem %s1360_s21, 16  ;;  %s1599_s23 = scalar_lea.vmem %s1360_s21, 32 }
 0x7b6   :  { %p1596_p0 = scmp.ne.s32.totalorder %s1360_s21, %s1595_s22  ;;  %p1600_p1 = scmp.lt.s32.totalorder %s1360_s21, %s1360_s21 }
 0x7b7   :  { %p1601_p2 = scmp.lt.s32.totalorder %s1599_s23, %s1595_s22 }
 0x7b9   :  { %p1602_p3 = por %p1601_p2, %p1600_p1 }
 0x7bb   :  { %p1603_p4 = pnand %p1602_p3, %p1596_p0 }
 0x7d8   :  { %v846_v12 = vpop.f32.mrf.mxu1 }
 0x7d9   :  { %v857_v13 = vmul.f32 %v856_v11, %v846_v12 }
 0x7da   :  { %v1516_v14 = vpop.f32.mrf.mxu1 }
 0x7db   :  { %v858_v15 = vsel %vm354_vm3, %v857_v13, -inf }
 0x7dc   :  { %859 = vmax.xlane.f32.xlu1 %v858_v15 }
 0x865   :  { %v860_v0 = vpop.xlane.xlu1 %859 }
 0x866   :  { %v861_v16 = vsub.f32 %v857_v13, %v860_v0 }
 0x868   :  { %v862_v18 = vmul.f32 1.442695, %v861_v16 }
 0x86a   :  { %1581 = vpow2.f32 %v862_v18 }
 0x877   :  { %v1582_v19 = vpop.eup %1581 }
 0x878   :  { %v864_v20 = vsel %vm354_vm3, %v1582_v19, 0.0 }
 0x879   :  { %865 = vadd.xlane.f32.xlu0 %v864_v20 }
 0x902   :  { %v866_v21 = vpop.xlane.xlu0 %865 }
 0x903   :  { %1583 = vrcp.f32 %v866_v21 }
 0x910   :  { %v1584_v22 = vpop.eup %1583 }
 0x911   :  { %v868_v23 = vmul.f32 %v1584_v22, %v1582_v19 }
 0x913   :  { %1520 = vmatmul.mubr.msk.f32.vlgmr.msra.gmra.mxu1 %vm366_vm5, %v868_v23 }
 0x914   :  { %1523 = vmatpush3.xpose.msk.msra.mxu1 %vm41_vm0, %v39_v17  ;;  %1530 = vmatprep.mubr.msk.f32.mxu1 %vm1618_vm1, %v1617_v1 }
 0x915   :  { %1524 = vmatprep.subr.mxu1 %v1617_v1 }
 0x918   :  { %1525 = vmatpush3.xpose.msk.msra.mxu1 %vm41_vm0, %v38_v24 }
 0x919   :  { %1526 = vmatprep.subr.mxu1 %v1617_v1 }
 0x91c   :  { %1527 = vmatpush3.xpose.msk.msra.mxu1 %vm41_vm0, %v37_v25 }
 0x91d   :  { %1528 = vmatprep.subr.mxu1 %v1617_v1 }
 0x920   :  { %1529 = vmatpush3.xpose.msk.msra.mxu1 %vm41_vm0, %v36_v26 }
 0x921   :  { %1554 = vmatprep.subr.mxu1 %v1617_v1 }
 0x9d3   :  { %v938_v28 = vpop.f32.mrf.mxu1 }
 0x9d4   :  { %v942_v29 = vadd.f32 %v938_v28, %v773_v5 }
 0x9d5   :  { %v1521_v30 = vpop.f32.mrf.mxu1 }
 0x9d6   :  { %1531 = vmatmul.mubr.msk.f32.vlgmr.msra.gmra.mxu1 %vm41_vm0, %v942_v29 }
 0x9d7   :  { %1555 = vmatpush3.xpose.msk.msra.mxu1 %vm41_vm0, %v1716_v27  ;;  %1556 = vmatprep.mubr.msk.f32.mxu1 %vm1618_vm1, %v1617_v1 }
 0xa96   :  { %v1024_v31 = vpop.f32.mrf.mxu1 }
 0xa97   :  { %1536 = vmatmul.mubr.msk.f32.vlgmr.msra.gmra.mxu0 %vm41_vm0, %v1024_v31  ;;  %v1101_v32 = vmul.f32 %v1024_v31, %v1024_v31 }
 0xa98   :  { %v1532_v33 = vpop.f32.mrf.mxu1  ;;  %1539 = vmatpush3.msk.msra.mxu0 %vm629_vm7, %v1785_v59  ;;  %1540 = vmatprep.mubr.msk.f32.mxu0 %vm1618_vm1, %v1617_v1 }
 0xa99   :  { %v1102_v34 = vsel %vm346_vm2, %v1101_v32, 0.0  ;;  %1543 = vmatprep.subr.mxu0 %v1617_v1 }
 0xa9a   :  { %1103 = vadd.xlane.f32.xlu1 %v1102_v34 }
 0xb23   :  { %v1104_v27 = vpop.xlane.xlu1 %1103 }
 0xb24   :  { %1585 = vrsqrt.f32 %v1104_v27 }
 0xb31   :  { %v1586_v36 = vpop.eup %1585 }
 0xb32   :  { %v1106_v37 = vmul.f32 %v1586_v36, %v1777_v47 }
 0xb34   :  { %v1107_v38 = vmin.f32 %v1106_v37, 1000000.0 }
 0xb57   :  { %v1097_v39 = vpop.f32.mrf.mxu0 }
 0xb58   :  { %v1108_v40 = vmul.f32 %v1107_v38, %v1097_v39 }
 0xb59   :  { %v1537_v41 = vpop.f32.mrf.mxu0 }
 0xb5a   :  { %v1109_v42 = vsel %vm613_vm6, %v1108_v40, -inf }
 0xb5b   :  { %1110 = vmax.xlane.f32.xlu0 %v1109_v42 }
 0xbe4   :  { %v1111_v43 = vpop.xlane.xlu0 %1110 }
 0xbe5   :  { %v1112_v44 = vsub.f32 %v1108_v40, %v1111_v43 }
 0xbe7   :  { %v1113_v45 = vmul.f32 1.442695, %v1112_v44 }
 0xbe9   :  { %1587 = vpow2.f32 %v1113_v45 }
 0xbf6   :  { %v1588_v46 = vpop.eup %1587 }
 0xbf7   :  { %v1115_v48 = vsel %vm613_vm6, %v1588_v46, 0.0 }
 0xbf8   :  { %1116 = vadd.xlane.f32.xlu1 %v1115_v48 }
 0xc81   :  { %v1117_v49 = vpop.xlane.xlu1 %1116 }
 0xc82   :  { %1589 = vrcp.f32 %v1117_v49 }
 0xc8f   :  { %v1590_v50 = vpop.eup %1589 }
 0xc90   :  { %v1119_v51 = vmul.f32 %v1590_v50, %v1588_v46 }
 0xc92   :  { %1541 = vmatmul.mubr.msk.f32.vlgmr.msra.gmra.mxu0 %vm625_vm8, %v1119_v51 }
 0xc93   :  { %1544 = vmatpush3.xpose.msk.msra.mxu0 %vm41_vm0, %v39_v17  ;;  %1551 = vmatprep.mubr.msk.f32.mxu0 %vm1618_vm1, %v1617_v1 }
 0xc94   :  { %1545 = vmatprep.subr.mxu0 %v1617_v1 }
 0xc97   :  { %1546 = vmatpush3.xpose.msk.msra.mxu0 %vm41_vm0, %v38_v24 }
 0xc98   :  { %1547 = vmatprep.subr.mxu0 %v1617_v1 }
 0xc9b   :  { %1548 = vmatpush3.xpose.msk.msra.mxu0 %vm41_vm0, %v37_v25 }
 0xc9c   :  { %1549 = vmatprep.subr.mxu0 %v1617_v1 }
 0xc9f   :  { %1550 = vmatpush3.xpose.msk.msra.mxu0 %vm41_vm0, %v36_v26 }
 0xd52   :  { %v1189_v47 = vpop.f32.mrf.mxu0 }
 0xd53   :  { %v1193_v52 = vadd.f32 %v1189_v47, %v1024_v31 }
 0xd54   :  { %v1542_v53 = vpop.f32.mrf.mxu0 }
 0xd55   :  { %1552 = vmatmul.mubr.msk.f32.vlgmr.msra.gmra.mxu0 %vm41_vm0, %v1193_v52 }
 0xe15   :  { %v1263_v54 = vpop.f32.mrf.mxu0 }
 0xe16   :  { %v1343_v55 = vmul.f32 %v1263_v54, %v1263_v54  ;;  %1557 = vmatmul.mubr.msk.f32.vlgmr.msra.gmra.mxu1 %vm41_vm0, %v1263_v54 }
 0xe17   :  { %v1553_v56 = vpop.f32.mrf.mxu0 }
 0xe18   :  { %v1344_v57 = vsel %vm346_vm2, %v1343_v55, 0.0 }
 0xe19   :  { %1345 = vadd.xlane.f32.xlu0 %v1344_v57 }
 0xea2   :  { %v1346_v58 = vpop.xlane.xlu0 %1345 }
 0xea3   :  { %1591 = vrsqrt.f32 %v1346_v58 }
 0xea4   :  { %1593 = vrsqrt.f32 %v1758_v35 }
 0xeb0   :  { %v1592_v1 = vpop.eup %1591 }
 0xeb1   :  { %v1594_v59 = vpop.eup %1593 }
 0xeb2   :  { %v1348_v60 = vmul.f32 %v1594_v59, %v1592_v1 }
 0xeb4   :  { %v1349_v61 = vmin.f32 %v1348_v60, 1000000.0 }
 0xed6   :  { %v1339_v62 = vpop.f32.mrf.mxu1 }
 0xed7   :  { %v1350_v63 = vmul.f32 %v1349_v61, %v1339_v62 }
 0xed8   :  { %v1558_v2 = vpop.f32.mrf.mxu1 }
 0xed9   :  { %1352 = vst.msk [vmem:[#allocation2] sm:$0x1] %vm1351_vm9, %v1350_v63 }
 0xeda   :  { %1606 = shalt.err (!%p1603_p4)
}
 0xedb   :  { %1362 = dma.vmem_to_hbm [thread:$0]  %s1360_s21, 16, %s1882_s7, [#allocation3]  }
 0xedc   :  { %1615 = dma.done.wait [#allocation3], 16  }
 0xedd   :  { %1616 = vsyncadd [#allocation3], 4294967280 }
 0xede   :  { %1366 = vsyncpa [#allocation3], 1 }

</bundles_post_ra>
